<compile_context>
chip_gen: v6e
topology: v6e:2x2x1
jax: 0.10.0
libtpu: 0.0.40
codegen_flags: <defaults>
</compile_context>

<pallas_src>
import functools

import jax
import jax.numpy as jnp
import numpy as np
from jax.experimental import pallas as pl
from jax.experimental.pallas import tpu as pltpu


# ----------------------------------------------------------------------------
# Fused TSC kernel: scale -> online softmax over N -> probs @ feats^T
# ----------------------------------------------------------------------------

def _tsc_kernel(probs_ref, feats_ref, out_ref, m_ref, l_ref, acc_ref, *, scale):
    n = pl.program_id(1)

    @pl.when(n == 0)
    def _():
        m_ref[...] = jnp.full_like(m_ref, -jnp.inf)
        l_ref[...] = jnp.zeros_like(l_ref)
        acc_ref[...] = jnp.zeros_like(acc_ref)

    # probs tile: [K, TN] (f32 softmax statistics), feats tile: [C, TN] (native dtype)
    s = probs_ref[0].astype(jnp.float32) * scale
    f = feats_ref[0]

    m_prev = m_ref[...]                                            # [K, 1]
    m_new = jnp.maximum(m_prev, jnp.max(s, axis=-1, keepdims=True))
    alpha = jnp.exp(m_prev - m_new)                                # [K, 1]
    p = jnp.exp(s - m_new)                                         # [K, TN]
    l_ref[...] = alpha * l_ref[...] + jnp.sum(p, axis=-1, keepdims=True)

    # contraction over the spatial tile: [K, TN] x [C, TN]^T -> [K, C], f32 accumulate
    pv = jax.lax.dot_general(
        p.astype(f.dtype), f, (((1,), (1,)), ((), ())),
        preferred_element_type=jnp.float32)
    acc_ref[...] = alpha * acc_ref[...] + pv
    m_ref[...] = m_new

    @pl.when(n == pl.num_programs(1) - 1)
    def _():
        inv_l = pl.reciprocal(l_ref[...], approx=True)             # EUP slot
        out_ref[0] = (acc_ref[...] * inv_l).astype(out_ref.dtype)


def tsc_forward(feats, probs, scale):
    """feats: [B, C, H, W], probs: [B, K, H, W] -> [B, C, K, 1] (matches TSC.forward)."""
    B, C, H, W = feats.shape
    Bp, K, Hp, Wp = probs.shape
    assert (B, H, W) == (Bp, Hp, Wp)
    N = H * W

    # Largest lane-aligned spatial tile that divides N (falls back to full N).
    TN = N
    for cand in (512, 256, 128):
        if N % cand == 0:
            TN = cand
            break
    n_tiles = N // TN

    probs2 = probs.reshape(B, K, N)
    feats2 = feats.reshape(B, C, N)

    ctx = pl.pallas_call(
        functools.partial(_tsc_kernel, scale=float(scale)),
        grid=(B, n_tiles),
        in_specs=[
            pl.BlockSpec((1, K, TN), lambda b, n: (b, 0, n)),   # probs tile
            pl.BlockSpec((1, C, TN), lambda b, n: (b, 0, n)),   # feats tile
        ],
        out_specs=pl.BlockSpec((1, K, C), lambda b, n: (b, 0, 0)),  # resident across n
        out_shape=jax.ShapeDtypeStruct((B, K, C), feats.dtype),
        scratch_shapes=[
            pltpu.VMEM((K, 1), jnp.float32),   # running max m
            pltpu.VMEM((K, 1), jnp.float32),   # running denom l
            pltpu.VMEM((K, C), jnp.float32),   # accumulator
        ],
        compiler_params=pltpu.CompilerParams(
            dimension_semantics=("parallel", "arbitrary"),
            vmem_limit_bytes=32 * 1024 * 1024,
        ),
    )(probs2, feats2)

    # Tiny [B, K, C] -> [B, C, K, 1]; kernel output stays lane-dense (C on lanes).
    return jnp.transpose(ctx, (0, 2, 1))[..., None]


# ----------------------------------------------------------------------------
# Pure-JAX reference (mirror of the PyTorch forward) for correctness checking
# ----------------------------------------------------------------------------

def tsc_reference(feats, probs, scale):
    B, C, H, W = feats.shape
    K = probs.shape[1]
    p = probs.reshape(B, K, H * W).astype(jnp.float32)
    f = feats.reshape(B, C, H * W).astype(jnp.float32).transpose(0, 2, 1)
    p = jax.nn.softmax(scale * p, axis=2)
    ctx = jnp.einsum("bkn,bnc->bkc", p, f)
    return jnp.transpose(ctx, (0, 2, 1))[..., None]


# ----------------------------------------------------------------------------
# Demo
# ----------------------------------------------------------------------------

if __name__ == "__main__":
    key = jax.random.PRNGKey(0)
    kf, kp = jax.random.split(key)

    B, C, K, H, W = 2, 128, 8, 16, 16      # feats channels lane-dense (>=128)
    scale = 2.0
    feats = jax.random.normal(kf, (B, C, H, W), dtype=jnp.float32)
    probs = jax.random.normal(kp, (B, K, H, W), dtype=jnp.float32)

    fwd = jax.jit(functools.partial(tsc_forward, scale=scale))
    out = jax.block_until_ready(fwd(feats, probs))

    assert out.shape == (B, C, K, 1), out.shape
    ref = tsc_reference(feats, probs, scale)
    np.testing.assert_allclose(np.asarray(out), np.asarray(ref), rtol=1e-2, atol=1e-2)
    assert bool(jnp.isfinite(out).all())
    print("KERNEL_OK")
</pallas_src>

<mosaic_0001>
module attributes {stable_mosaic.version = 11 : i64} {
  func.func @_tsc_kernel(%arg0: i32, %arg1: i32, %arg2: memref<1x8x256xf32, #tpu.memory_space<vmem>>, %arg3: memref<1x128x256xf32, #tpu.memory_space<vmem>>, %arg4: memref<1x8x128xf32, #tpu.memory_space<vmem>>, %arg5: memref<8x1xf32, #tpu.memory_space<vmem>>, %arg6: memref<8x1xf32, #tpu.memory_space<vmem>>, %arg7: memref<8x128xf32, #tpu.memory_space<vmem>>) attributes {dimension_semantics = [#tpu.dimension_semantics<parallel>, #tpu.dimension_semantics<arbitrary>], iteration_bounds = array<i64: 2, 1>, scalar_prefetch = 0 : i64, scratch_operands = 3 : i64, tpu.core_type = #tpu.core_type<tc>, window_params = [{transform_indices = @transform_0, window_bounds = array<i64: 1, 8, 256>}, {transform_indices = @transform_1, window_bounds = array<i64: 1, 128, 256>}, {transform_indices = @transform_2, window_bounds = array<i64: 1, 8, 128>}]} {
    %c0_i32 = arith.constant 0 : i32
    %0 = arith.cmpi eq, %arg1, %c0_i32 : i32
    %1 = arith.extui %0 : i1 to i32
    %c0_i32_0 = arith.constant 0 : i32
    %2 = arith.cmpi ne, %1, %c0_i32_0 : i32
    scf.if %2 {
      %cst_23 = arith.constant 0xFF800000 : f32
      %34 = vector.broadcast %cst_23 : f32 to vector<8x1xf32>
      %c0_24 = arith.constant 0 : index
      %c0_25 = arith.constant 0 : index
      %35 = vector.load %arg5[%c0_24, %c0_25] : memref<8x1xf32, #tpu.memory_space<vmem>>, vector<8x1xf32>
      tpu.vector_store %arg5[%c0_24, %c0_25], %34 {strides = array<i32>} : memref<8x1xf32, #tpu.memory_space<vmem>>, vector<8x1xf32>,
      %cst_26 = arith.constant 0.000000e+00 : f32
      %36 = vector.broadcast %cst_26 : f32 to vector<8x1xf32>
      %c0_27 = arith.constant 0 : index
      %c0_28 = arith.constant 0 : index
      %37 = vector.load %arg6[%c0_27, %c0_28] : memref<8x1xf32, #tpu.memory_space<vmem>>, vector<8x1xf32>
      tpu.vector_store %arg6[%c0_27, %c0_28], %36 {strides = array<i32>} : memref<8x1xf32, #tpu.memory_space<vmem>>, vector<8x1xf32>,
      %cst_29 = arith.constant 0.000000e+00 : f32
      %38 = vector.broadcast %cst_29 : f32 to vector<8x128xf32>
      %c0_30 = arith.constant 0 : index
      %c0_31 = arith.constant 0 : index
      %39 = vector.load %arg7[%c0_30, %c0_31] : memref<8x128xf32, #tpu.memory_space<vmem>>, vector<8x128xf32>
      tpu.vector_store %arg7[%c0_30, %c0_31], %38 {strides = array<i32>} : memref<8x128xf32, #tpu.memory_space<vmem>>, vector<8x128xf32>,
    } else {
    }
    %c0 = arith.constant 0 : index
    %c0_1 = arith.constant 0 : index
    %c0_2 = arith.constant 0 : index
    %3 = vector.load %arg2[%c0, %c0_1, %c0_2] : memref<1x8x256xf32, #tpu.memory_space<vmem>>, vector<1x8x256xf32>
    %4 = vector.shape_cast %3 : vector<1x8x256xf32> to vector<8x256xf32>
    %cst = arith.constant 2.000000e+00 : f32
    %5 = vector.broadcast %cst : f32 to vector<8x256xf32>
    %6 = arith.mulf %4, %5 : vector<8x256xf32>
    %c0_3 = arith.constant 0 : index
    %c0_4 = arith.constant 0 : index
    %c0_5 = arith.constant 0 : index
    %7 = vector.load %arg3[%c0_3, %c0_4, %c0_5] : memref<1x128x256xf32, #tpu.memory_space<vmem>>, vector<1x128x256xf32>
    %8 = vector.shape_cast %7 : vector<1x128x256xf32> to vector<128x256xf32>
    %c0_6 = arith.constant 0 : index
    %c0_7 = arith.constant 0 : index
    %9 = vector.load %arg5[%c0_6, %c0_7] : memref<8x1xf32, #tpu.memory_space<vmem>>, vector<8x1xf32>
    %cst_8 = arith.constant dense<0xFF800000> : vector<8xf32>
    %10 = vector.multi_reduction <maximumf>, %6, %cst_8 [1] : vector<8x256xf32> to vector<8xf32>
    %11 = vector.shape_cast %10 : vector<8xf32> to vector<8x1xf32>
    %12 = arith.maximumf %9, %11 : vector<8x1xf32>
    %13 = arith.subf %9, %12 : vector<8x1xf32>
    %14 = math.exp %13 : vector<8x1xf32>
    %15 = vector.broadcast %12 : vector<8x1xf32> to vector<8x256xf32>
    %16 = arith.subf %6, %15 : vector<8x256xf32>
    %17 = math.exp %16 : vector<8x256xf32>
    %c0_9 = arith.constant 0 : index
    %c0_10 = arith.constant 0 : index
    %18 = vector.load %arg6[%c0_9, %c0_10] : memref<8x1xf32, #tpu.memory_space<vmem>>, vector<8x1xf32>
    %19 = arith.mulf %14, %18 : vector<8x1xf32>
    %cst_11 = arith.constant dense<0.000000e+00> : vector<8xf32>
    %20 = vector.multi_reduction <add>, %17, %cst_11 [1] : vector<8x256xf32> to vector<8xf32>
    %21 = vector.shape_cast %20 : vector<8xf32> to vector<8x1xf32>
    %22 = arith.addf %19, %21 : vector<8x1xf32>
    %c0_12 = arith.constant 0 : index
    %c0_13 = arith.constant 0 : index
    %23 = vector.load %arg6[%c0_12, %c0_13] : memref<8x1xf32, #tpu.memory_space<vmem>>, vector<8x1xf32>
    tpu.vector_store %arg6[%c0_12, %c0_13], %22 {strides = array<i32>} : memref<8x1xf32, #tpu.memory_space<vmem>>, vector<8x1xf32>,
    %cst_14 = arith.constant dense<0.000000e+00> : vector<8x128xf32>
    %24 = tpu.matmul %17, %8, %cst_14 {dimension_numbers = #tpu.dot_dimension_numbers<[1], [1], [0], [0], [0, 0, 1, 0], [], []>} : vector<8x256xf32>, vector<128x256xf32>, vector<8x128xf32> -> vector<8x128xf32>
    %c0_15 = arith.constant 0 : index
    %c0_16 = arith.constant 0 : index
    %25 = vector.load %arg7[%c0_15, %c0_16] : memref<8x128xf32, #tpu.memory_space<vmem>>, vector<8x128xf32>
    %26 = vector.broadcast %14 : vector<8x1xf32> to vector<8x128xf32>
    %27 = arith.mulf %26, %25 : vector<8x128xf32>
    %28 = arith.addf %27, %24 : vector<8x128xf32>
    %c0_17 = arith.constant 0 : index
    %c0_18 = arith.constant 0 : index
    %29 = vector.load %arg7[%c0_17, %c0_18] : memref<8x128xf32, #tpu.memory_space<vmem>>, vector<8x128xf32>
    tpu.vector_store %arg7[%c0_17, %c0_18], %28 {strides = array<i32>} : memref<8x128xf32, #tpu.memory_space<vmem>>, vector<8x128xf32>,
    %c0_19 = arith.constant 0 : index
    %c0_20 = arith.constant 0 : index
    %30 = vector.load %arg5[%c0_19, %c0_20] : memref<8x1xf32, #tpu.memory_space<vmem>>, vector<8x1xf32>
    tpu.vector_store %arg5[%c0_19, %c0_20], %12 {strides = array<i32>} : memref<8x1xf32, #tpu.memory_space<vmem>>, vector<8x1xf32>,
    %c0_i32_21 = arith.constant 0 : i32
    %31 = arith.cmpi eq, %arg1, %c0_i32_21 : i32
    %32 = arith.extui %31 : i1 to i32
    %c0_i32_22 = arith.constant 0 : i32
    %33 = arith.cmpi ne, %32, %c0_i32_22 : i32
    scf.if %33 {
      %c0_23 = arith.constant 0 : index
      %c0_24 = arith.constant 0 : index
      %34 = vector.load %arg6[%c0_23, %c0_24] : memref<8x1xf32, #tpu.memory_space<vmem>>, vector<8x1xf32>
      %35 = tpu.reciprocal %34 {approx = true} : vector<8x1xf32> -> vector<8x1xf32>
      %c0_25 = arith.constant 0 : index
      %c0_26 = arith.constant 0 : index
      %36 = vector.load %arg7[%c0_25, %c0_26] : memref<8x128xf32, #tpu.memory_space<vmem>>, vector<8x128xf32>
      %37 = vector.broadcast %35 : vector<8x1xf32> to vector<8x128xf32>
      %38 = arith.mulf %36, %37 : vector<8x128xf32>
      %c0_27 = arith.constant 0 : index
      %c0_28 = arith.constant 0 : index
      %c0_29 = arith.constant 0 : index
      %39 = vector.load %arg4[%c0_27, %c0_28, %c0_29] : memref<1x8x128xf32, #tpu.memory_space<vmem>>, vector<1x8x128xf32>
      %40 = vector.shape_cast %39 : vector<1x8x128xf32> to vector<8x128xf32>
      %41 = vector.shape_cast %38 : vector<8x128xf32> to vector<1x8x128xf32>
      tpu.vector_store %arg4[%c0_27, %c0_28, %c0_29], %41 {strides = array<i32>} : memref<1x8x128xf32, #tpu.memory_space<vmem>>, vector<1x8x128xf32>,
    } else {
    }
    return
  }
  func.func @transform_0(%arg0: i32, %arg1: i32) -> (i32, i32, i32) {
    %c0_i32 = arith.constant 0 : i32
    %c0_i32_0 = arith.constant 0 : i32
    return %arg0, %c0_i32, %arg1 : i32, i32, i32
  }
  func.func @transform_1(%arg0: i32, %arg1: i32) -> (i32, i32, i32) {
    %c0_i32 = arith.constant 0 : i32
    %c0_i32_0 = arith.constant 0 : i32
    return %arg0, %c0_i32, %arg1 : i32, i32, i32
  }
  func.func @transform_2(%arg0: i32, %arg1: i32) -> (i32, i32, i32) {
    %c0_i32 = arith.constant 0 : i32
    %c0_i32_0 = arith.constant 0 : i32
    %c0_i32_1 = arith.constant 0 : i32
    return %arg0, %c0_i32, %c0_i32_0 : i32, i32, i32
  }
}

</mosaic_0001>

<bundles_post_ra>
// kernel: tsc_forward.1
= control target key start
LH: loop header
LB: loop body
LE: loop exit
PB: predicated region body
PF: predicated region fallthrough
CT: control target
= control target key end

     0   :  { %7 = vsyncpa [#allocation6], 0  ;;  %s804_s0 = inlined_call_operand.vmem [shape: f32[2,8,256], index: 0, kind: input, shape index: {}]   ;;  %s805_s1 = inlined_call_operand.vmem [shape: f32[2,128,256], index: 1, kind: input, shape index: {}]   ;;  %s806_s2 = inlined_call_operand.hbm [shape: f32[2,8,128], index: 2, kind: output, shape index: {}]  }
   0x1   :  { %9 = vsyncpa [#allocation6 + $0x1], 0  ;;  %s656_s9 = smov 0   ;;  %s658_s10 = smov 0  }
   0x2   :  { %s660_s11 = smov 0   ;;  %s662_s12 = smov 0  }
   0x3   :  { %s664_s13 = smov 0   ;;  %s666_s14 = smov 0  }
   0x4 LB: > { %s475_s15 = sadd.s32 4294967295, %s635_s14   ;;  %s476_s16 = sadd.s32 4294967294, %s635_s14   ;;  %s635_s14 = sphi %s666_s14, %s15_s14   ;;  %s631_s13 = sphi %s664_s13, %s813_s13   ;;  %s627_s12 = sphi %s662_s12, %s812_s12   ;;  %s623_s11 = sphi %s660_s11, %s811_s11   ;;  %s619_s10 = sphi %s658_s10, %s810_s10   ;;  %s615_s9 = sphi %s656_s9, %s809_s9  }
   0x5   : > { %s27_s17 = sadd.s32 1, %s631_s13  ;;  %s90_s18 = sadd.s32 1, %s623_s11 }
   0x6   : > { %p29_p0 = scmp.ge.s32.totalorder %s27_s17, 2  ;;  %p100_p1 = scmp.ne.s32.totalorder %s623_s11, %s619_s10 }
   0x7   : > { %p101_p2 = scmp.eq.s32.totalorder %s475_s15, 1  ;;  %p106_p3 = scmp.ne.s32.totalorder %s619_s10, %s615_s9 }
   0x8   : > { %s815_s17 = smov (%p29_p0, %s27_s17), 0  ;;  %p107_p5 = scmp.eq.s32.totalorder %s476_s16, 1 }
   0x9   : > { %p696_p4 = por %p101_p2, %p100_p1  ;;  %s87_s20 = ssub.s32 %s631_s13, %s815_s17 }
   0xa   : > { %p479_p6 = scmp.ge.s32.totalorder %s635_s14, 1  ;;  %p88_p7 = scmp.eq.s32.totalorder %s87_s20, 0 }
   0xb   : > { %p703_p8 = por %p107_p5, %p106_p3  ;;  %p151_p9 = scmp.lt.s32.totalorder %s635_s14, 3 }
   0xc   : > { %s709_s22 = scalar_select %p88_p7, %s623_s11, %s90_s18  }
   0xd   : > { %p152_p10 = pnand %p479_p6, %p151_p9 }
   0xe   : > { %p187_p11 = scmp.lt.s32.totalorder (!%p152_p10), %s627_s12, 1  ;;  %s183_s4 = sand.u32 (!%p152_p10), 1, %s619_s10  }
   0xf   : > { %155 = sbr.rel (%p152_p10) target bundleno = 615 (0x267), region = 28  ;;  %s480_s5 = sshll.u32 (!%p152_p10), %s183_s4, 3 }
  0x10   : > { %s486_s6 = sshll.u32 (!%p152_p10), %s627_s12, 7  ;;  %s185_s7 = scalar_lea.vmem (!%p152_p10), [#allocation5], %s480_s5 }
  0x11   : > { %s384_s8 = sshll.u32 (!%p152_p10), %s185_s7, 4  ;;  %s382_s18 = scalar_lea.hbm (!%p152_p10), %s806_s2, %s486_s6  ;;  %s385_s8 = int_to_ptr.vmem [resolvable:$true] %s384_s8 }
  0x12   : > { %s371_s20 = scalar_lea.sflag (!%p152_p10), [#allocation6], %s183_s4 }
  0x14   : > { %vm210_vm0 = vcmask 7168   ;;  %v637_v0 = vmov -inf   ;;  %s188_s23 = scalar_select %p187_p11, %s627_s12, 1  ;;  %v638_v6 = vmov 0   ;;  %v639_v13 = vmov 0.0  }
  0x15   : > { %211 = vst.msk [vmem:[#allocation2] sm:$0xff] %vm210_vm0, %v637_v0  ;;  %549 = vset.pattern.permute.xlu0 %v638_v6  ;;  %550 = vset.pattern.permute.xlu1 %v638_v6  ;;  %212 = vst.msk [vmem:[#allocation3] sm:$0xff] %vm210_vm0, %v639_v13 }
  0x16   : > { %s489_s24 = sshll.u32 %s188_s23, 4  ;;  %s490_s28 = sshll.u32 %s188_s23, 8 }
  0x17   : > { %s194_s27 = scalar_lea.vmem %s804_s0, %s489_s24  ;;  %s726_s3 = scalar_lea.vmem %s805_s1, %s490_s28 }
  0x18   : > { %v214_v1 = vld [vmem:[%s194_s27] sm:$0xff]  ;;  %v215_v2 = vld [vmem:[%s194_s27 + $0x8] sm:$0xff]  ;;  %v249_v7 = vld [vmem:[%s726_s3 + $0xf8] sm:$0xff]  ;;  %s559_s23 = scalar_lea.vmem %s385_s8, 128  ;;  %s640_s24 = smov [#allocation5]  }
  0x19   : > { %v717_v3 = vmul.f32 2.0, %v214_v1  ;;  %v719_v4 = vmul.f32 2.0, %v215_v2  ;;  %v248_v8 = vld [vmem:[%s726_s3 + $0xf0] sm:$0xff]  ;;  %v247_v9 = vld [vmem:[%s726_s3 + $0xe8] sm:$0xff]  ;;  %277 = vmatprep.subr.mxu0 %v249_v7  ;;  %v246_v10 = vld [vmem:[%s726_s3 + $0xe0] sm:$0xff]  ;;  %p560_p12 = scmp.ne.s32.totalorder %s385_s8, %s559_s23  ;;  %s563_s25 = sshll.u32 %s640_s24, 4  ;;  %s564_s25 = int_to_ptr.vmem [resolvable:$false] %s563_s25 }
  0x1a   : > { %278 = vmatpush1.xpose.msra.mxu0 %v248_v8  ;;  %v245_v11 = vld [vmem:[%s726_s3 + $0xd8] sm:$0xff]  ;;  %v244_v12 = vld [vmem:[%s726_s3 + $0xd0] sm:$0xff]  ;;  %v243_v14 = vld [vmem:[%s726_s3 + $0xc8] sm:$0xff]  ;;  %s565_s12 = scalar_lea.vmem %s564_s25, 256  ;;  %p566_p1 = scmp.lt.s32.totalorder %s385_s8, %s564_s25 }
  0x1b   : > { %v251_v5 = vmax.f32 %v717_v3, %v719_v4  ;;  %279 = vmatprep.subr.mxu0 %v247_v9  ;;  %v242_v15 = vld [vmem:[%s726_s3 + $0xc0] sm:$0xff]  ;;  %v241_v16 = vld [vmem:[%s726_s3 + $0xb8] sm:$0xff]  ;;  %v240_v17 = vld [vmem:[%s726_s3 + $0xb0] sm:$0xff]  ;;  %p561_p13 = pnand %p560_p12, %p696_p4  ;;  %p567_p2 = scmp.lt.s32.totalorder %s565_s12, %s559_s23 }
  0x1c   : > { %v239_v18 = vld [vmem:[%s726_s3 + $0xa8] sm:$0xff]  ;;  %v238_v19 = vld [vmem:[%s726_s3 + $0xa0] sm:$0xff]  ;;  %v237_v20 = vld [vmem:[%s726_s3 + $0x98] sm:$0xff] }
  0x1d   : > { %252 = vmax.xlane.f32.xlu0 %v251_v5  ;;  %v236_v21 = vld [vmem:[%s726_s3 + $0x90] sm:$0xff]  ;;  %v235_v22 = vld [vmem:[%s726_s3 + $0x88] sm:$0xff]  ;;  %v234_v23 = vld [vmem:[%s726_s3 + $0x80] sm:$0xff]  ;;  %p562_p0 = pneg %p561_p13  ;;  %p568_p3 = por %p567_p2, %p566_p1 }
  0x1e   : > { %280 = vmatpush1.xpose.msra.mxu0 %v246_v10  ;;  %v233_v24 = vld [vmem:[%s726_s3 + $0x78] sm:$0xff]  ;;  %v232_v25 = vld [vmem:[%s726_s3 + $0x70] sm:$0xff]  ;;  %v231_v26 = vld [vmem:[%s726_s3 + $0x68] sm:$0xff] }
  0x1f   : > { %281 = vmatprep.subr.mxu0 %v245_v11  ;;  %v230_v27 = vld [vmem:[%s726_s3 + $0x60] sm:$0xff]  ;;  %v229_v28 = vld [vmem:[%s726_s3 + $0x58] sm:$0xff]  ;;  %v228_v29 = vld [vmem:[%s726_s3 + $0x50] sm:$0xff]  ;;  %p569_p5 = pnand %p568_p3, %p562_p0 }
  0x20   : > { %v227_v30 = vld [vmem:[%s726_s3 + $0x48] sm:$0xff]  ;;  %v250_v31 = vld [vmem:[#allocation2] sm:$0xff]  ;;  %v225_v35 = vld [vmem:[%s726_s3 + $0x38] sm:$0xff] }
  0x21   : > { %v226_v32 = vld [vmem:[%s726_s3 + $0x40] sm:$0xff]  ;;  %v224_v37 = vld [vmem:[%s726_s3 + $0x30] sm:$0xff]  ;;  %v223_v38 = vld [vmem:[%s726_s3 + $0x28] sm:$0xff] }
  0x22   : > { %282 = vmatpush1.xpose.msra.mxu0 %v244_v12  ;;  %v222_v39 = vld [vmem:[%s726_s3 + $0x20] sm:$0xff]  ;;  %v221_v40 = vld [vmem:[%s726_s3 + $0x18] sm:$0xff]  ;;  %v220_v41 = vld [vmem:[%s726_s3 + $0x10] sm:$0xff] }
  0x23   : > { %283 = vmatprep.subr.mxu0 %v243_v14  ;;  %v219_v42 = vld [vmem:[%s726_s3 + $0x8] sm:$0xff]  ;;  %v218_v43 = vld [vmem:[%s726_s3] sm:$0xff] }
  0x24   : > { %v269_v54 = vld [vmem:[#allocation3] sm:$0xff] }
  0x26   : > { %284 = vmatpush1.xpose.msra.mxu0 %v242_v15 }
  0x27   : > { %285 = vmatprep.subr.mxu0 %v241_v16 }
  0x2a   : > { %286 = vmatpush1.xpose.msra.mxu0 %v240_v17 }
  0x2b   : > { %287 = vmatprep.subr.mxu0 %v239_v18 }
  0x2e   : > { %288 = vmatpush1.xpose.msra.mxu0 %v238_v19 }
  0x2f   : > { %289 = vmatprep.subr.mxu0 %v237_v20 }
  0x32   : > { %290 = vmatpush1.xpose.msra.mxu0 %v236_v21 }
  0x33   : > { %291 = vmatprep.subr.mxu0 %v235_v22 }
  0x36   : > { %292 = vmatpush1.xpose.msra.mxu0 %v234_v23 }
  0x37   : > { %293 = vmatprep.subr.mxu0 %v233_v24 }
  0x3a   : > { %294 = vmatpush1.xpose.msra.mxu0 %v232_v25 }
  0x3b   : > { %295 = vmatprep.subr.mxu0 %v231_v26 }
  0x3e   : > { %296 = vmatpush1.xpose.msra.mxu0 %v230_v27 }
  0x3f   : > { %297 = vmatprep.subr.mxu0 %v229_v28 }
  0x42   : > { %298 = vmatpush1.xpose.msra.mxu0 %v228_v29 }
  0x43   : > { %299 = vmatprep.subr.mxu0 %v227_v30 }
  0x46   : > { %300 = vmatpush1.xpose.msra.mxu0 %v226_v32 }
  0x47   : > { %301 = vmatprep.subr.mxu0 %v225_v35 }
  0x4a   : > { %302 = vmatpush1.xpose.msra.mxu0 %v224_v37 }
  0x4b   : > { %303 = vmatprep.subr.mxu0 %v223_v38 }
  0x4e   : > { %304 = vmatpush1.xpose.msra.mxu0 %v222_v39 }
  0x4f   : > { %305 = vmatprep.subr.mxu0 %v221_v40 }
  0x52   : > { %306 = vmatpush1.xpose.msra.mxu0 %v220_v41 }
  0x53   : > { %307 = vmatprep.subr.mxu0 %v219_v42 }
  0x56   : > { %308 = vmatpush1.xpose.msra.mxu0 %v218_v43 }
  0xa6   : > { %v253_v33 = vpop.xlane.xlu0 %252 }
  0xa7   : > { %v254_v34 = vmax.f32 %v250_v31, %v253_v33 }
  0xa9   : > { %v255_v36 = vsub.f32 %v250_v31, %v254_v34  ;;  %356 = vst.msk [vmem:[#allocation2] sm:$0xff] %vm210_vm0, %v254_v34  ;;  %260 = vperm.xlu0 %549, %v254_v34  }
  0xab   : > { %v256_v52 = vmul.f32 1.442695, %v255_v36 }
 0x124   : > { %v261_v44 = vpop.permute.xlu0 %260 }
 0x125   : > { %v263_v45 = vsub.f32 %v717_v3, %v261_v44  ;;  %v264_v46 = vsub.f32 %v719_v4, %v261_v44 }
 0x127   : > { %v265_v47 = vmul.f32 1.442695, %v263_v45  ;;  %v267_v48 = vmul.f32 1.442695, %v264_v46 }
 0x129   : > { %551 = vpow2.f32 %v265_v47 }
 0x12a   : > { %553 = vpow2.f32 %v267_v48 }
 0x12b   : > { %555 = vpow2.f32 %v256_v52 }
 0x136   : > { %v552_v49 = vpop.eup %551 }
 0x137   : > { %v554_v50 = vpop.eup %553 }
 0x138   : > { %341 = vmatprep.mubr.f32.mxu0 %v554_v50  ;;  %v271_v51 = vadd.f32 %v554_v50, %v552_v49  ;;  %v556_v53 = vpop.eup %555 }
 0x139   : > { %342 = vmatmul.mubr.f32.vlgmr.msra.gmra.mxu0 %v552_v49  ;;  %v270_v55 = vmul.f32 %v556_v53, %v269_v54 }
 0x13a   : > { %272 = vadd.xlane.f32.xlu1 %v271_v51 }
 0x14b   : > { %350 = vperm.xlu1 %550, %v556_v53  }
 0x1c3   : > { %v273_v56 = vpop.xlane.xlu1 %272 }
 0x1c4   : > { %v274_v57 = vadd.f32 %v273_v56, %v270_v55 }
 0x1c6   : > { %276 = vst.msk [vmem:[#allocation3] sm:$0xff] %vm210_vm0, %v274_v57 }
 0x1c7   : > { %v351_v62 = vpop.permute.xlu1 %350 }
 0x1c8   : > { %v353_v63 = vmul.f32 0.0, %v351_v62 }
 0x1cd   : > { %v360_v58 = vld [vmem:[#allocation3] sm:$0xff] }
 0x1ce   : > { %557 = vrcp.f32 %v360_v58 }
 0x1db   : > { %v558_v59 = vpop.eup %557 }
 0x1dc   : > { %365 = vperm.xlu1 %550, %v558_v59  }
 0x1f9   : > { %v343_v60 = vpop.f32.mrf.mxu0 }
 0x1fa   : > { %v354_v0 = vadd.f32 %v353_v63, %v343_v60 }
 0x1fb   : > { %v345_v61 = vpop.f32.mrf.mxu0 }
 0x257   : > { %v366_v1 = vpop.permute.xlu1 %365 }
 0x258   : > { %v368_v2 = vmul.f32 %v366_v1, %v354_v0 }
 0x25a   : > { %369 = vst [vmem:[%s185_s7] sm:$0xff] %v368_v2 }
 0x25b   : > { %572 = shalt.err (!%p569_p5)
}
 0x25c   : > { %s573_s26 = scalar_lea.hbm %s382_s18, 128  ;;  %s577_s29 = scalar_lea.hbm %s806_s2, 256 }
 0x25d   : > { %p574_p6 = scmp.ne.s32.totalorder %s382_s18, %s573_s26  ;;  %p578_p10 = scmp.lt.s32.totalorder %s382_s18, %s806_s2 }
 0x25e   : > { %p579_p11 = scmp.lt.s32.totalorder %s577_s29, %s573_s26 }
 0x25f   : > { %p575_p7 = pnand %p574_p6, %p696_p4 }
 0x260   : > { %p580_p12 = por %p579_p11, %p578_p10 }
 0x261   : > { %p576_p9 = pneg %p575_p7 }
 0x263   : > { %p581_p13 = pnand %p580_p12, %p576_p9 }
 0x265   : > { %584 = shalt.err (!%p581_p13)
}
 0x266   : > { %491 = dma.vmem_to_hbm [thread:$0]  (%p696_p4), %s385_s8, 128, %s382_s18, %s371_s20  }
 0x267 PF: > { %p497_p0 = scmp.ge.s32.totalorder %s635_s14, 2  ;;  %s396_s4 = sand.u32 1, %s615_s9  }
 0x268   : > { %s397_s5 = scalar_lea.sflag [#allocation6], %s396_s4 }
 0x269   : > { %p494_p1 = pnand %p497_p0, %p703_p8 }
 0x26b   : > { %p495_p2 = pneg %p494_p1 }
 0x26d   : > { %610 = dma.done.wait (%p495_p2), %s397_s5, 128  }
 0x26e   : > { %612 = vsyncadd (%p495_p2), %s397_s5, 4294967168  ;;  %s15_s14 = sadd.s32 1, %s635_s14   ;;  %s809_s9 = smov %s619_s10 }
 0x26f   : > { %p12_p3 = scmp.ge.s32.totalorder %s15_s14, 4   ;;  %s810_s10 = smov %s623_s11 }
 0x270   : > { %s811_s11 = smov %s709_s22  ;;  %s812_s12 = smov %s631_s13 }
 0x271   : > { %s813_s13 = smov %s815_s17  ;;  %14 = sbr.rel (!%p12_p3) target bundleno = 4 (0x4), region = 74 }
 0x276   :  { %402 = vsyncpa [#allocation6], 1 }
 0x277   :  { %404 = vsyncpa [#allocation6 + $0x1], 1 }

</bundles_post_ra>
